<compile_context>
chip_gen: v7x
topology: tpu7x:2x2x1
jax: 0.10.0
libtpu: 0.0.40
codegen_flags: <defaults>
</compile_context>

<pallas_src>
from functools import partial
import itertools
import math

import numpy as np
import jax
import jax.numpy as jnp
from jax.experimental import pallas as pl
from jax.experimental.pallas import tpu as pltpu

try:  # exact assignment if scipy is around; otherwise a local fallback is used
    from scipy.optimize import linear_sum_assignment as _scipy_lsa
except Exception:  # pragma: no cover
    _scipy_lsa = None

_EPS_LOG = 1e-8
_EPS_DIV = 1e-12


def _fpow(x, p):
    p = float(p)
    if p == 2.0:
        return x * x
    if p == 1.0:
        return x
    return x ** p


# ---------------------------------------------------------------------------
# Kernel 1: per-frame DETR cost matrix (CompDETRCostMatrix), one frame / step
# ---------------------------------------------------------------------------
def _cost_matrix_kernel(prob_ref, pbox_ref, oh_ref, tboxT_ref, out_ref, *,
                        alpha, gamma, class_w, bbox_w, giou_w, num_classes):
    prob = prob_ref[0].astype(jnp.float32)     # [Q, C] predicted class probs
    pbox = pbox_ref[0].astype(jnp.float32)     # [Q, 4] cxcywh
    oh = oh_ref[0].astype(jnp.float32)         # [C, T] one-hot target labels
    tbT = tboxT_ref[0].astype(jnp.float32)     # [4, T] target cxcywh, transposed

    # Focal class cost; the gather over target labels is a one-hot broadcast
    # (num_classes is tiny for MOT, so a static unroll beats an MXU matmul).
    neg = (1.0 - alpha) * _fpow(prob, gamma) * (-jnp.log(1.0 - prob + _EPS_LOG))
    pos = alpha * _fpow(1.0 - prob, gamma) * (-jnp.log(prob + _EPS_LOG))
    pn = pos - neg                                                # [Q, C]
    cost_class = pn[:, 0:1] * oh[0:1, :]                          # [Q, T]
    for c in range(1, num_classes):
        cost_class = cost_class + pn[:, c:c + 1] * oh[c:c + 1, :]

    pcx, pcy, pw, ph = (pbox[:, k:k + 1] for k in range(4))       # each [Q, 1]
    tcx, tcy, tw, th = (tbT[k:k + 1, :] for k in range(4))        # each [1, T]

    # L1 cdist over (cx, cy, w, h)
    cost_bbox = (jnp.abs(pcx - tcx) + jnp.abs(pcy - tcy)
                 + jnp.abs(pw - tw) + jnp.abs(ph - th))           # [Q, T]

    # Pairwise GIoU on xyxy boxes
    px0, py0 = pcx - 0.5 * pw, pcy - 0.5 * ph
    px1, py1 = pcx + 0.5 * pw, pcy + 0.5 * ph
    tx0, ty0 = tcx - 0.5 * tw, tcy - 0.5 * th
    tx1, ty1 = tcx + 0.5 * tw, tcy + 0.5 * th
    area_p = (px1 - px0) * (py1 - py0)                            # [Q, 1]
    area_t = (tx1 - tx0) * (ty1 - ty0)                            # [1, T]
    iw = jnp.maximum(jnp.minimum(px1, tx1) - jnp.maximum(px0, tx0), 0.0)
    ih = jnp.maximum(jnp.minimum(py1, ty1) - jnp.maximum(py0, ty0), 0.0)
    inter = iw * ih
    union = area_p + area_t - inter
    iou = inter / jnp.maximum(union, _EPS_DIV)
    cw_ = jnp.maximum(px1, tx1) - jnp.minimum(px0, tx0)
    ch_ = jnp.maximum(py1, ty1) - jnp.minimum(py0, ty0)
    area_c = jnp.maximum(cw_ * ch_, _EPS_DIV)
    giou = iou - (area_c - union) / area_c
    cost_giou = -giou

    out_ref[0] = (bbox_w * cost_bbox + class_w * cost_class
                  + giou_w * cost_giou).astype(out_ref.dtype)


def compute_cost_matrices(prob, pbox, onehot, tboxT, *, alpha=0.25, gamma=2.0,
                          class_weight=1.0, bbox_weight=1.0, giou_weight=1.0):
    """All (clip, frame) DETR cost matrices in one pallas_call.

    prob:   [N, Q, C]  predicted class probabilities
    pbox:   [N, Q, 4]  predicted boxes (cxcywh)
    onehot: [N, C, T]  one-hot target labels (all-zero column for empty slots)
    tboxT:  [N, 4, T]  target boxes (cxcywh), transposed
    returns [N, Q, T]  cost matrices.
    """
    N, Q, C = prob.shape
    T = onehot.shape[2]
    kernel = partial(_cost_matrix_kernel, alpha=float(alpha), gamma=float(gamma),
                     class_w=float(class_weight), bbox_w=float(bbox_weight),
                     giou_w=float(giou_weight), num_classes=C)
    return pl.pallas_call(
        kernel,
        out_shape=jax.ShapeDtypeStruct((N, Q, T), jnp.float32),
        grid_spec=pltpu.PrefetchScalarGridSpec(
            num_scalar_prefetch=0,
            grid=(N,),
            in_specs=[
                pl.BlockSpec((1, Q, C), lambda i: (i, 0, 0)),
                pl.BlockSpec((1, Q, 4), lambda i: (i, 0, 0)),
                pl.BlockSpec((1, C, T), lambda i: (i, 0, 0)),
                pl.BlockSpec((1, 4, T), lambda i: (i, 0, 0)),
            ],
            out_specs=pl.BlockSpec((1, Q, T), lambda i: (i, 0, 0)),
        ),
        compiler_params=pltpu.CompilerParams(
            dimension_semantics=("parallel",)),
    )(prob, pbox, onehot, tboxT)


# ---------------------------------------------------------------------------
# Kernel 2: focal classification loss (loss_labels / focal_loss), global sum
# ---------------------------------------------------------------------------
def _focal_cls_loss_kernel(x_ref, t_ref, o_ref, *, alpha, gamma, inv_num_boxes):
    x = x_ref[...].astype(jnp.float32)
    t = t_ref[...].astype(jnp.float32)
    # numerically stable binary_cross_entropy_with_logits
    ce = jnp.maximum(x, 0.0) - x * t + jnp.log(1.0 + jnp.exp(-jnp.abs(x)))
    p_t = x * t + (1.0 - x) * (1.0 - t)
    loss = ce * _fpow(1.0 - p_t, gamma)
    if alpha >= 0:
        loss = (alpha * t + (1.0 - alpha) * (1.0 - t)) * loss
    o_ref[...] = jnp.full((1, 1), jnp.sum(loss) * inv_num_boxes, dtype=o_ref.dtype)


def focal_cls_loss_sum(x, t, *, alpha=0.25, gamma=2.0, num_boxes=1.0):
    N, C = x.shape
    kernel = partial(_focal_cls_loss_kernel, alpha=float(alpha),
                     gamma=float(gamma), inv_num_boxes=1.0 / float(num_boxes))
    out = pl.pallas_call(
        kernel,
        out_shape=jax.ShapeDtypeStruct((1, 1), jnp.float32),
        grid=(1,),
        in_specs=[pl.BlockSpec((N, C), lambda i: (0, 0)),
                  pl.BlockSpec((N, C), lambda i: (0, 0))],
        out_specs=pl.BlockSpec((1, 1), lambda i: (0, 0)),
    )(x, t)
    return out[0, 0]


# ---------------------------------------------------------------------------
# Kernel 3: matched-box L1 + GIoU loss (loss_boxes), masked global sum
# ---------------------------------------------------------------------------
def _box_loss_kernel(s_ref, t_ref, m_ref, o_ref):
    s = s_ref[...].astype(jnp.float32)      # [N, 4] matched pred boxes (cxcywh)
    t = t_ref[...].astype(jnp.float32)      # [N, 4] matched target boxes
    m = m_ref[...].astype(jnp.float32)      # [N, 1] validity mask (0 = padding)

    l1 = jnp.sum(m * jnp.abs(s - t))

    def xyxy(b):
        cx, cy, w, h = b[:, 0:1], b[:, 1:2], b[:, 2:3], b[:, 3:4]
        return cx - 0.5 * w, cy - 0.5 * h, cx + 0.5 * w, cy + 0.5 * h

    sx0, sy0, sx1, sy1 = xyxy(s)
    tx0, ty0, tx1, ty1 = xyxy(t)
    area_s = (sx1 - sx0) * (sy1 - sy0)
    area_t = (tx1 - tx0) * (ty1 - ty0)
    iw = jnp.maximum(jnp.minimum(sx1, tx1) - jnp.maximum(sx0, tx0), 0.0)
    ih = jnp.maximum(jnp.minimum(sy1, ty1) - jnp.maximum(sy0, ty0), 0.0)
    inter = iw * ih
    union = area_s + area_t - inter
    iou = inter / jnp.maximum(union, _EPS_DIV)
    cw_ = jnp.maximum(sx1, tx1) - jnp.minimum(sx0, tx0)
    ch_ = jnp.maximum(sy1, ty1) - jnp.minimum(sy0, ty0)
    area_c = jnp.maximum(cw_ * ch_, _EPS_DIV)
    giou = iou - (area_c - union) / area_c             # [N, 1]
    giou_loss = jnp.sum(m * (1.0 - giou))

    o_ref[...] = jnp.full((1, 1), l1 + giou_loss, dtype=o_ref.dtype)


def box_loss_sum(src, tgt, mask):
    N = src.shape[0]
    out = pl.pallas_call(
        _box_loss_kernel,
        out_shape=jax.ShapeDtypeStruct((1, 1), jnp.float32),
        grid=(1,),
        in_specs=[pl.BlockSpec((N, 4), lambda i: (0, 0)),
                  pl.BlockSpec((N, 4), lambda i: (0, 0)),
                  pl.BlockSpec((N, 1), lambda i: (0, 0))],
        out_specs=pl.BlockSpec((1, 1), lambda i: (0, 0)),
    )(src, tgt, mask)
    return out[0, 0]


# ---------------------------------------------------------------------------
# Host-side pieces (the original runs its matcher on CPU as well)
# ---------------------------------------------------------------------------
def _linear_sum_assignment(cost):
    """Min-cost assignment (CPUHungarianMatcher equivalent)."""
    cost = np.asarray(cost, dtype=np.float64)
    n, m = cost.shape
    if n == 0 or m == 0:
        return np.zeros((0,), np.int64), np.zeros((0,), np.int64)
    if _scipy_lsa is not None:
        r, c = _scipy_lsa(cost)
        return np.asarray(r, np.int64), np.asarray(c, np.int64)
    transpose = n > m
    work = cost.T if transpose else cost
    k, l = work.shape
    rows = np.arange(k)
    if math.perm(l, k) <= 2_000_000:
        best_cost, best_cols = None, None
        for perm in itertools.permutations(range(l), k):
            s = work[rows, list(perm)].sum()
            if best_cost is None or s < best_cost:
                best_cost, best_cols = s, np.asarray(perm, np.int64)
        rr, cc = rows.astype(np.int64), best_cols
    else:
        # TODO(synk): exact O(n^3) Hungarian for large frames without scipy.
        rows_left, cols_left, pairs = set(range(k)), set(range(l)), []
        for idx in np.argsort(work, axis=None):
            i, j = divmod(int(idx), l)
            if i in rows_left and j in cols_left:
                pairs.append((i, j))
                rows_left.discard(i)
                cols_left.discard(j)
                if not rows_left:
                    break
        rr = np.asarray([p[0] for p in pairs], np.int64)
        cc = np.asarray([p[1] for p in pairs], np.int64)
    if transpose:
        rr, cc = cc, rr
        order = np.argsort(rr)
        rr, cc = rr[order], cc[order]
    return rr, cc


def _prepare_cost_inputs(input_cls, input_bbox, target_bbox, target_cls):
    B, F, Q, C = input_cls.shape
    T = target_bbox.shape[2]
    tc_np = np.asarray(jax.device_get(target_cls)).astype(np.int64)
    valid = tc_np > -1
    onehot_np = np.zeros((B, F, T, C), np.float32)
    bb, ff, tt = np.nonzero(valid)
    onehot_np[bb, ff, tt, np.clip(tc_np[bb, ff, tt], 0, C - 1)] = 1.0
    prob = jnp.reshape(input_cls, (B * F, Q, C))
    pbox = jnp.reshape(input_bbox, (B * F, Q, 4))
    onehot = jnp.asarray(onehot_np.transpose(0, 1, 3, 2).reshape(B * F, C, T))
    tboxT = jnp.reshape(jnp.transpose(target_bbox, (0, 1, 3, 2)), (B * F, 4, T))
    return prob, pbox, onehot, tboxT


def motr_loss(input_bbox, target_bbox, input_cls, target_cls, target_id,
              *, num_classes=1, loss_weight=1.0, global_step=0):
    """MOTRLoss.forward: host-side tracking/matching + Pallas dense math."""
    del global_step  # not used by the loss
    B, F, Q, _ = input_bbox.shape
    T = target_bbox.shape[2]
    C = input_cls.shape[3]
    assert C == num_classes

    # Host copies of the (detached) tensors needed for bookkeeping / gathers.
    ib_np = np.asarray(jax.device_get(input_bbox)).astype(np.float32)
    tb_np = np.asarray(jax.device_get(target_bbox)).astype(np.float32)
    tc_np = np.asarray(jax.device_get(target_cls)).astype(np.int64)
    tid_np = np.asarray(jax.device_get(target_id)).astype(np.int64)
    valid_np = tc_np > -1

    # ---- Phase 1: every frame's cost matrix in one Pallas call --------------
    prob, pbox, onehot, tboxT = _prepare_cost_inputs(
        input_cls, input_bbox, target_bbox, target_cls)
    cost = compute_cost_matrices(prob, pbox, onehot, tboxT)
    cost_np = np.asarray(jax.device_get(cost)).reshape(B, F, Q, T)

    # ---- Phase 2: sequential tracking + Hungarian matching (host) -----------
    num_samples = 0
    cls_tgt = np.zeros((B, F, Q, C), np.float32)   # one-hot class targets
    box_src = np.zeros((B, F, Q, 4), np.float32)   # matched pred boxes (padded)
    box_tgt = np.zeros((B, F, Q, 4), np.float32)   # matched target boxes
    box_msk = np.zeros((B, F, Q, 1), np.float32)   # validity mask

    for b in range(B):
        track_obj = np.full((Q,), -1, np.int64)    # _generate_empty_tracks
        track_gt = np.full((Q,), -1, np.int64)
        for f in range(F):
            slots = np.nonzero(valid_np[b, f])[0]  # clip_target_to_instances
            gt_labels = tc_np[b, f, slots]
            gt_boxes = tb_np[b, f, slots]
            gt_ids = tid_np[b, f, slots]
            G = int(slots.shape[0])
            obj_to_gt = {int(o): g for g, o in enumerate(gt_ids)}

            num_disappear = 0
            for j in range(Q):
                oid = int(track_obj[j])
                if oid >= 0:
                    if oid in obj_to_gt:
                        track_gt[j] = obj_to_gt[oid]
                    else:
                        num_disappear += 1
                        track_gt[j] = -1
                else:
                    track_gt[j] = -1

            prev_rows = np.nonzero(track_obj >= 0)[0]
            prev_pairs = np.stack([prev_rows, track_gt[prev_rows]],
                                  axis=1).astype(np.int64)
            unmatched_q = np.nonzero(track_obj == -1)[0]
            tracked = track_gt[track_gt != -1]
            tgt_state = np.zeros((G,), np.int64)
            if tracked.size:
                tgt_state[tracked] = 1
            untracked_g = np.nonzero(tgt_state == 0)[0]

            if unmatched_q.size and untracked_g.size:
                sub = cost_np[b, f][np.ix_(unmatched_q, slots[untracked_g])]
                r, c = _linear_sum_assignment(sub)
                new_pairs = np.stack([unmatched_q[r], untracked_g[c]],
                                     axis=1).astype(np.int64)
            else:
                new_pairs = np.zeros((0, 2), np.int64)

            if new_pairs.size:
                track_obj[new_pairs[:, 0]] = gt_ids[new_pairs[:, 1]]
                track_gt[new_pairs[:, 0]] = new_pairs[:, 1]

            matched = np.concatenate([new_pairs, prev_pairs], axis=0)
            num_samples += G + num_disappear

            # loss_labels targets: background everywhere, then foreground
            # one-hot for queries matched to a live GT (J == -1 stays bg).
            tclasses = np.full((Q,), num_classes, np.int64)
            if matched.size:
                J = matched[:, 1]
                labels_per = np.ones_like(J)
                if G > 0:
                    sel = J != -1
                    labels_per[sel] = gt_labels[J[sel]]
                tclasses[matched[:, 0]] = labels_per
            fg = np.nonzero(tclasses < num_classes)[0]
            cls_tgt[b, f, fg, tclasses[fg]] = 1.0

            # loss_boxes pairs: drop tgt == -1, mask obj_id == -1.
            keep = matched[matched[:, 1] != -1]
            m = int(keep.shape[0])
            if m:
                box_src[b, f, :m] = ib_np[b, f, keep[:, 0]]
                box_tgt[b, f, :m] = gt_boxes[keep[:, 1]]
                box_msk[b, f, :m, 0] = (gt_ids[keep[:, 1]] != -1).astype(np.float32)

    # ---- Phase 3: batched loss reductions on TPU -----------------------------
    cls_total = focal_cls_loss_sum(
        jnp.reshape(input_cls, (B * F * Q, C)),
        jnp.asarray(cls_tgt.reshape(B * F * Q, C)),
        alpha=0.25, gamma=2.0, num_boxes=1.0)
    box_total = box_loss_sum(
        jnp.asarray(box_src.reshape(B * F * Q, 4)),
        jnp.asarray(box_tgt.reshape(B * F * Q, 4)),
        jnp.asarray(box_msk.reshape(B * F * Q, 1)))

    # Original divides by num_samples; the max() only guards the no-GT case.
    total = (cls_total + box_total) / jnp.float32(max(num_samples, 1))
    total = total * jnp.float32(loss_weight)
    return total


# ---------------------------------------------------------------------------
# Pure-numpy references for kernel unit checks
# ---------------------------------------------------------------------------
def _ref_cost(prob, pbox, onehot, tboxT, alpha=0.25, gamma=2.0):
    prob = np.asarray(prob, np.float64)
    pbox = np.asarray(pbox, np.float64)
    onehot = np.asarray(onehot, np.float64)
    tbox = np.asarray(tboxT, np.float64).transpose(0, 2, 1)          # [N, T, 4]
    neg = (1 - alpha) * prob ** gamma * -np.log(1 - prob + _EPS_LOG)
    pos = alpha * (1 - prob) ** gamma * -np.log(prob + _EPS_LOG)
    cost_class = np.einsum('nqc,nct->nqt', pos - neg, onehot)
    cost_bbox = np.abs(pbox[:, :, None, :] - tbox[:, None, :, :]).sum(-1)

    def xyxy(b):
        return np.concatenate([b[..., :2] - 0.5 * b[..., 2:],
                               b[..., :2] + 0.5 * b[..., 2:]], -1)

    p = xyxy(pbox)[:, :, None, :]
    t = xyxy(tbox)[:, None, :, :]
    area_p = (p[..., 2] - p[..., 0]) * (p[..., 3] - p[..., 1])
    area_t = (t[..., 2] - t[..., 0]) * (t[..., 3] - t[..., 1])
    iw = np.clip(np.minimum(p[..., 2], t[..., 2]) - np.maximum(p[..., 0], t[..., 0]), 0, None)
    ih = np.clip(np.minimum(p[..., 3], t[..., 3]) - np.maximum(p[..., 1], t[..., 1]), 0, None)
    inter = iw * ih
    union = area_p + area_t - inter
    iou = inter / np.maximum(union, _EPS_DIV)
    cw = np.maximum(p[..., 2], t[..., 2]) - np.minimum(p[..., 0], t[..., 0])
    ch = np.maximum(p[..., 3], t[..., 3]) - np.minimum(p[..., 1], t[..., 1])
    area_c = np.maximum(cw * ch, _EPS_DIV)
    giou = iou - (area_c - union) / area_c
    return cost_bbox + cost_class - giou


def _ref_focal_sum(x, t, alpha=0.25, gamma=2.0):
    x = np.asarray(x, np.float64)
    t = np.asarray(t, np.float64)
    ce = np.maximum(x, 0) - x * t + np.log1p(np.exp(-np.abs(x)))
    p_t = x * t + (1 - x) * (1 - t)
    loss = ce * (1 - p_t) ** gamma
    loss = (alpha * t + (1 - alpha) * (1 - t)) * loss
    return loss.sum()


def _ref_box_sum(s, t, m):
    s = np.asarray(s, np.float64)
    t = np.asarray(t, np.float64)
    m = np.asarray(m, np.float64)
    l1 = (m * np.abs(s - t)).sum()

    def xyxy(b):
        return np.concatenate([b[:, :2] - 0.5 * b[:, 2:], b[:, :2] + 0.5 * b[:, 2:]], -1)

    sp, tp = xyxy(s), xyxy(t)
    area_s = (sp[:, 2] - sp[:, 0]) * (sp[:, 3] - sp[:, 1])
    area_t = (tp[:, 2] - tp[:, 0]) * (tp[:, 3] - tp[:, 1])
    iw = np.clip(np.minimum(sp[:, 2], tp[:, 2]) - np.maximum(sp[:, 0], tp[:, 0]), 0, None)
    ih = np.clip(np.minimum(sp[:, 3], tp[:, 3]) - np.maximum(sp[:, 1], tp[:, 1]), 0, None)
    inter = iw * ih
    union = area_s + area_t - inter
    iou = inter / np.maximum(union, _EPS_DIV)
    cw = np.maximum(sp[:, 2], tp[:, 2]) - np.minimum(sp[:, 0], tp[:, 0])
    ch = np.maximum(sp[:, 3], tp[:, 3]) - np.minimum(sp[:, 1], tp[:, 1])
    area_c = np.maximum(cw * ch, _EPS_DIV)
    giou = iou - (area_c - union) / area_c
    return l1 + (m[:, 0] * (1 - giou)).sum()


if __name__ == "__main__":
    key = jax.random.PRNGKey(0)
    B, F, Q, C, T = 2, 3, 8, 1, 5
    k1, k2, k3, k4, k5, k6, k7 = jax.random.split(key, 7)

    def rand_boxes(k, shape_prefix):
        kc, ks = jax.random.split(k)
        centers = jax.random.uniform(kc, shape_prefix + (2,), minval=0.25, maxval=0.75)
        sizes = jax.random.uniform(ks, shape_prefix + (2,), minval=0.05, maxval=0.30)
        return jnp.concatenate([centers, sizes], axis=-1).astype(jnp.float32)

    input_bbox = rand_boxes(k1, (B, F, Q))                       # [B,F,Q,4] cxcywh
    input_cls = jax.random.uniform(k2, (B, F, Q, C), minval=0.05, maxval=0.95,
                                   dtype=jnp.float32)            # probs
    target_bbox = rand_boxes(k3, (B, F, T))                      # [B,F,T,4]

    # Deterministic GT layout: every frame has >=1 live object (matches the
    # reference code's assumption), ids persist within a clip, and some
    # objects disappear to exercise the disappearing-track path.
    target_cls_np = np.full((B, F, T), -1, np.int32)
    target_id_np = np.full((B, F, T), -1, np.int32)
    for b in range(B):
        for f in range(F):
            g = 2 + ((b + f) % 3)                                # 2..4 live objects
            target_cls_np[b, f, :g] = 0                          # single class
            target_id_np[b, f, :g] = 100 * b + np.arange(g)      # persistent ids
    target_cls = jnp.asarray(target_cls_np, dtype=jnp.int32)
    target_id = jnp.asarray(target_id_np, dtype=jnp.int32)

    # --- unit-check kernel 1 (cost matrices) against numpy -------------------
    prob, pbox, onehot, tboxT = _prepare_cost_inputs(
        input_cls, input_bbox, target_bbox, target_cls)
    cost_k = np.asarray(jax.device_get(compute_cost_matrices(prob, pbox, onehot, tboxT)))
    cost_r = _ref_cost(jax.device_get(prob), jax.device_get(pbox),
                       jax.device_get(onehot), jax.device_get(tboxT))
    assert np.allclose(cost_k, cost_r, rtol=1e-4, atol=1e-4), "cost matrix mismatch"

    # --- unit-check kernels 2 & 3 against numpy -------------------------------
    xs = jax.random.uniform(k4, (B * F * Q, C), minval=0.05, maxval=0.95,
                            dtype=jnp.float32)
    ts = (jax.random.uniform(k5, (B * F * Q, C)) > 0.5).astype(jnp.float32)
    f_out = float(focal_cls_loss_sum(xs, ts))
    assert np.allclose(f_out, _ref_focal_sum(jax.device_get(xs), jax.device_get(ts)),
                       rtol=1e-4, atol=1e-4), "focal loss mismatch"

    sb = rand_boxes(k6, (B * F * Q,))
    tb = rand_boxes(k7, (B * F * Q,))
    mk = jnp.ones((B * F * Q, 1), jnp.float32).at[::3].set(0.0)
    b_out = float(box_loss_sum(sb, tb, mk))
    assert np.allclose(b_out, _ref_box_sum(jax.device_get(sb), jax.device_get(tb),
                                           jax.device_get(mk)),
                       rtol=1e-4, atol=1e-4), "box loss mismatch"

    # --- full MOTRLoss.forward ------------------------------------------------
    total = motr_loss(input_bbox, target_bbox, input_cls, target_cls, target_id,
                      num_classes=C, loss_weight=1.0, global_step=0)
    jax.block_until_ready(total)
    assert np.isfinite(float(total)), "non-finite MOTR loss"

    print("KERNEL_OK")
</pallas_src>

<mosaic_0001>
module attributes {stable_mosaic.version = 11 : i64} {
  func.func @_cost_matrix_kernel(%arg0: i32, %arg1: memref<1x8x1xf32, #tpu.memory_space<vmem>>, %arg2: memref<1x8x4xf32, #tpu.memory_space<vmem>>, %arg3: memref<1x1x5xf32, #tpu.memory_space<vmem>>, %arg4: memref<1x4x5xf32, #tpu.memory_space<vmem>>, %arg5: memref<1x8x5xf32, #tpu.memory_space<vmem>>) attributes {dimension_semantics = [#tpu.dimension_semantics<parallel>], iteration_bounds = array<i64: 6>, scalar_prefetch = 0 : i64, scratch_operands = 0 : i64, tpu.core_type = #tpu.core_type<tc>, window_params = [{transform_indices = @transform_0, window_bounds = array<i64: 1, 8, 1>}, {transform_indices = @transform_1, window_bounds = array<i64: 1, 8, 4>}, {transform_indices = @transform_2, window_bounds = array<i64: 1, 1, 5>}, {transform_indices = @transform_3, window_bounds = array<i64: 1, 4, 5>}, {transform_indices = @transform_4, window_bounds = array<i64: 1, 8, 5>}]} {
    %c0 = arith.constant 0 : index
    %c0_0 = arith.constant 0 : index
    %c0_1 = arith.constant 0 : index
    %0 = vector.load %arg1[%c0, %c0_0, %c0_1] : memref<1x8x1xf32, #tpu.memory_space<vmem>>, vector<1x8x1xf32>
    %1 = vector.shape_cast %0 : vector<1x8x1xf32> to vector<8x1xf32>
    %c0_2 = arith.constant 0 : index
    %c0_3 = arith.constant 0 : index
    %c0_4 = arith.constant 0 : index
    %2 = vector.load %arg2[%c0_2, %c0_3, %c0_4] : memref<1x8x4xf32, #tpu.memory_space<vmem>>, vector<1x8x4xf32>
    %3 = vector.shape_cast %2 : vector<1x8x4xf32> to vector<8x4xf32>
    %c0_5 = arith.constant 0 : index
    %c0_6 = arith.constant 0 : index
    %c0_7 = arith.constant 0 : index
    %4 = vector.load %arg3[%c0_5, %c0_6, %c0_7] : memref<1x1x5xf32, #tpu.memory_space<vmem>>, vector<1x1x5xf32>
    %5 = vector.shape_cast %4 : vector<1x1x5xf32> to vector<1x5xf32>
    %c0_8 = arith.constant 0 : index
    %c0_9 = arith.constant 0 : index
    %c0_10 = arith.constant 0 : index
    %6 = vector.load %arg4[%c0_8, %c0_9, %c0_10] : memref<1x4x5xf32, #tpu.memory_space<vmem>>, vector<1x4x5xf32>
    %7 = vector.shape_cast %6 : vector<1x4x5xf32> to vector<4x5xf32>
    %8 = arith.mulf %1, %1 : vector<8x1xf32>
    %cst = arith.constant 7.500000e-01 : f32
    %9 = vector.broadcast %cst : f32 to vector<8x1xf32>
    %10 = arith.mulf %9, %8 : vector<8x1xf32>
    %cst_11 = arith.constant 1.000000e+00 : f32
    %11 = vector.broadcast %cst_11 : f32 to vector<8x1xf32>
    %12 = arith.subf %11, %1 : vector<8x1xf32>
    %cst_12 = arith.constant 9.99999993E-9 : f32
    %13 = vector.broadcast %cst_12 : f32 to vector<8x1xf32>
    %14 = arith.addf %12, %13 : vector<8x1xf32>
    %15 = math.log %14 : vector<8x1xf32>
    %cst_13 = arith.constant 0.000000e+00 : f32
    %16 = vector.broadcast %cst_13 : f32 to vector<8x1xf32>
    %17 = arith.subf %16, %15 : vector<8x1xf32>
    %18 = arith.mulf %10, %17 : vector<8x1xf32>
    %cst_14 = arith.constant 1.000000e+00 : f32
    %19 = vector.broadcast %cst_14 : f32 to vector<8x1xf32>
    %20 = arith.subf %19, %1 : vector<8x1xf32>
    %21 = arith.mulf %20, %20 : vector<8x1xf32>
    %cst_15 = arith.constant 2.500000e-01 : f32
    %22 = vector.broadcast %cst_15 : f32 to vector<8x1xf32>
    %23 = arith.mulf %22, %21 : vector<8x1xf32>
    %cst_16 = arith.constant 9.99999993E-9 : f32
    %24 = vector.broadcast %cst_16 : f32 to vector<8x1xf32>
    %25 = arith.addf %1, %24 : vector<8x1xf32>
    %26 = math.log %25 : vector<8x1xf32>
    %cst_17 = arith.constant 0.000000e+00 : f32
    %27 = vector.broadcast %cst_17 : f32 to vector<8x1xf32>
    %28 = arith.subf %27, %26 : vector<8x1xf32>
    %29 = arith.mulf %23, %28 : vector<8x1xf32>
    %30 = arith.subf %29, %18 : vector<8x1xf32>
    %31 = vector.broadcast %30 : vector<8x1xf32> to vector<8x5xf32>
    %32 = vector.broadcast %5 : vector<1x5xf32> to vector<8x5xf32>
    %33 = arith.mulf %31, %32 : vector<8x5xf32>
    %34 = vector.extract_strided_slice %3 {offsets = [0, 0], sizes = [8, 1], strides = [1, 1]} : vector<8x4xf32> to vector<8x1xf32>
    %35 = vector.extract_strided_slice %3 {offsets = [0, 1], sizes = [8, 1], strides = [1, 1]} : vector<8x4xf32> to vector<8x1xf32>
    %36 = vector.extract_strided_slice %3 {offsets = [0, 2], sizes = [8, 1], strides = [1, 1]} : vector<8x4xf32> to vector<8x1xf32>
    %37 = vector.extract_strided_slice %3 {offsets = [0, 3], sizes = [8, 1], strides = [1, 1]} : vector<8x4xf32> to vector<8x1xf32>
    %38 = vector.extract_strided_slice %7 {offsets = [0, 0], sizes = [1, 5], strides = [1, 1]} : vector<4x5xf32> to vector<1x5xf32>
    %39 = vector.extract_strided_slice %7 {offsets = [1, 0], sizes = [1, 5], strides = [1, 1]} : vector<4x5xf32> to vector<1x5xf32>
    %40 = vector.extract_strided_slice %7 {offsets = [2, 0], sizes = [1, 5], strides = [1, 1]} : vector<4x5xf32> to vector<1x5xf32>
    %41 = vector.extract_strided_slice %7 {offsets = [3, 0], sizes = [1, 5], strides = [1, 1]} : vector<4x5xf32> to vector<1x5xf32>
    %42 = vector.broadcast %34 : vector<8x1xf32> to vector<8x5xf32>
    %43 = vector.broadcast %38 : vector<1x5xf32> to vector<8x5xf32>
    %44 = arith.subf %42, %43 : vector<8x5xf32>
    %45 = math.absf %44 : vector<8x5xf32>
    %46 = vector.broadcast %35 : vector<8x1xf32> to vector<8x5xf32>
    %47 = vector.broadcast %39 : vector<1x5xf32> to vector<8x5xf32>
    %48 = arith.subf %46, %47 : vector<8x5xf32>
    %49 = math.absf %48 : vector<8x5xf32>
    %50 = arith.addf %45, %49 : vector<8x5xf32>
    %51 = vector.broadcast %36 : vector<8x1xf32> to vector<8x5xf32>
    %52 = vector.broadcast %40 : vector<1x5xf32> to vector<8x5xf32>
    %53 = arith.subf %51, %52 : vector<8x5xf32>
    %54 = math.absf %53 : vector<8x5xf32>
    %55 = arith.addf %50, %54 : vector<8x5xf32>
    %56 = vector.broadcast %37 : vector<8x1xf32> to vector<8x5xf32>
    %57 = vector.broadcast %41 : vector<1x5xf32> to vector<8x5xf32>
    %58 = arith.subf %56, %57 : vector<8x5xf32>
    %59 = math.absf %58 : vector<8x5xf32>
    %60 = arith.addf %55, %59 : vector<8x5xf32>
    %cst_18 = arith.constant 5.000000e-01 : f32
    %61 = vector.broadcast %cst_18 : f32 to vector<8x1xf32>
    %62 = arith.mulf %61, %36 : vector<8x1xf32>
    %63 = arith.subf %34, %62 : vector<8x1xf32>
    %cst_19 = arith.constant 5.000000e-01 : f32
    %64 = vector.broadcast %cst_19 : f32 to vector<8x1xf32>
    %65 = arith.mulf %64, %37 : vector<8x1xf32>
    %66 = arith.subf %35, %65 : vector<8x1xf32>
    %cst_20 = arith.constant 5.000000e-01 : f32
    %67 = vector.broadcast %cst_20 : f32 to vector<8x1xf32>
    %68 = arith.mulf %67, %36 : vector<8x1xf32>
    %69 = arith.addf %34, %68 : vector<8x1xf32>
    %cst_21 = arith.constant 5.000000e-01 : f32
    %70 = vector.broadcast %cst_21 : f32 to vector<8x1xf32>
    %71 = arith.mulf %70, %37 : vector<8x1xf32>
    %72 = arith.addf %35, %71 : vector<8x1xf32>
    %cst_22 = arith.constant 5.000000e-01 : f32
    %73 = vector.broadcast %cst_22 : f32 to vector<1x5xf32>
    %74 = arith.mulf %73, %40 : vector<1x5xf32>
    %75 = arith.subf %38, %74 : vector<1x5xf32>
    %cst_23 = arith.constant 5.000000e-01 : f32
    %76 = vector.broadcast %cst_23 : f32 to vector<1x5xf32>
    %77 = arith.mulf %76, %41 : vector<1x5xf32>
    %78 = arith.subf %39, %77 : vector<1x5xf32>
    %cst_24 = arith.constant 5.000000e-01 : f32
    %79 = vector.broadcast %cst_24 : f32 to vector<1x5xf32>
    %80 = arith.mulf %79, %40 : vector<1x5xf32>
    %81 = arith.addf %38, %80 : vector<1x5xf32>
    %cst_25 = arith.constant 5.000000e-01 : f32
    %82 = vector.broadcast %cst_25 : f32 to vector<1x5xf32>
    %83 = arith.mulf %82, %41 : vector<1x5xf32>
    %84 = arith.addf %39, %83 : vector<1x5xf32>
    %85 = arith.subf %69, %63 : vector<8x1xf32>
    %86 = arith.subf %72, %66 : vector<8x1xf32>
    %87 = arith.mulf %85, %86 : vector<8x1xf32>
    %88 = arith.subf %81, %75 : vector<1x5xf32>
    %89 = arith.subf %84, %78 : vector<1x5xf32>
    %90 = arith.mulf %88, %89 : vector<1x5xf32>
    %91 = vector.broadcast %69 : vector<8x1xf32> to vector<8x5xf32>
    %92 = vector.broadcast %81 : vector<1x5xf32> to vector<8x5xf32>
    %93 = arith.minimumf %91, %92 : vector<8x5xf32>
    %94 = vector.broadcast %63 : vector<8x1xf32> to vector<8x5xf32>
    %95 = vector.broadcast %75 : vector<1x5xf32> to vector<8x5xf32>
    %96 = arith.maximumf %94, %95 : vector<8x5xf32>
    %97 = arith.subf %93, %96 : vector<8x5xf32>
    %cst_26 = arith.constant 0.000000e+00 : f32
    %98 = vector.broadcast %cst_26 : f32 to vector<8x5xf32>
    %99 = arith.maximumf %97, %98 : vector<8x5xf32>
    %100 = vector.broadcast %72 : vector<8x1xf32> to vector<8x5xf32>
    %101 = vector.broadcast %84 : vector<1x5xf32> to vector<8x5xf32>
    %102 = arith.minimumf %100, %101 : vector<8x5xf32>
    %103 = vector.broadcast %66 : vector<8x1xf32> to vector<8x5xf32>
    %104 = vector.broadcast %78 : vector<1x5xf32> to vector<8x5xf32>
    %105 = arith.maximumf %103, %104 : vector<8x5xf32>
    %106 = arith.subf %102, %105 : vector<8x5xf32>
    %cst_27 = arith.constant 0.000000e+00 : f32
    %107 = vector.broadcast %cst_27 : f32 to vector<8x5xf32>
    %108 = arith.maximumf %106, %107 : vector<8x5xf32>
    %109 = arith.mulf %99, %108 : vector<8x5xf32>
    %110 = vector.broadcast %87 : vector<8x1xf32> to vector<8x5xf32>
    %111 = vector.broadcast %90 : vector<1x5xf32> to vector<8x5xf32>
    %112 = arith.addf %110, %111 : vector<8x5xf32>
    %113 = arith.subf %112, %109 : vector<8x5xf32>
    %cst_28 = arith.constant 9.99999996E-13 : f32
    %114 = vector.broadcast %cst_28 : f32 to vector<8x5xf32>
    %115 = arith.maximumf %113, %114 : vector<8x5xf32>
    %116 = arith.divf %109, %115 : vector<8x5xf32>
    %117 = vector.broadcast %69 : vector<8x1xf32> to vector<8x5xf32>
    %118 = vector.broadcast %81 : vector<1x5xf32> to vector<8x5xf32>
    %119 = arith.maximumf %117, %118 : vector<8x5xf32>
    %120 = vector.broadcast %63 : vector<8x1xf32> to vector<8x5xf32>
    %121 = vector.broadcast %75 : vector<1x5xf32> to vector<8x5xf32>
    %122 = arith.minimumf %120, %121 : vector<8x5xf32>
    %123 = arith.subf %119, %122 : vector<8x5xf32>
    %124 = vector.broadcast %72 : vector<8x1xf32> to vector<8x5xf32>
    %125 = vector.broadcast %84 : vector<1x5xf32> to vector<8x5xf32>
    %126 = arith.maximumf %124, %125 : vector<8x5xf32>
    %127 = vector.broadcast %66 : vector<8x1xf32> to vector<8x5xf32>
    %128 = vector.broadcast %78 : vector<1x5xf32> to vector<8x5xf32>
    %129 = arith.minimumf %127, %128 : vector<8x5xf32>
    %130 = arith.subf %126, %129 : vector<8x5xf32>
    %131 = arith.mulf %123, %130 : vector<8x5xf32>
    %cst_29 = arith.constant 9.99999996E-13 : f32
    %132 = vector.broadcast %cst_29 : f32 to vector<8x5xf32>
    %133 = arith.maximumf %131, %132 : vector<8x5xf32>
    %134 = arith.subf %133, %113 : vector<8x5xf32>
    %135 = arith.divf %134, %133 : vector<8x5xf32>
    %136 = arith.subf %116, %135 : vector<8x5xf32>
    %cst_30 = arith.constant 0.000000e+00 : f32
    %137 = vector.broadcast %cst_30 : f32 to vector<8x5xf32>
    %138 = arith.subf %137, %136 : vector<8x5xf32>
    %cst_31 = arith.constant 1.000000e+00 : f32
    %139 = vector.broadcast %cst_31 : f32 to vector<8x5xf32>
    %140 = arith.mulf %139, %60 : vector<8x5xf32>
    %cst_32 = arith.constant 1.000000e+00 : f32
    %141 = vector.broadcast %cst_32 : f32 to vector<8x5xf32>
    %142 = arith.mulf %141, %33 : vector<8x5xf32>
    %143 = arith.addf %140, %142 : vector<8x5xf32>
    %cst_33 = arith.constant 1.000000e+00 : f32
    %144 = vector.broadcast %cst_33 : f32 to vector<8x5xf32>
    %145 = arith.mulf %144, %138 : vector<8x5xf32>
    %146 = arith.addf %143, %145 : vector<8x5xf32>
    %c0_34 = arith.constant 0 : index
    %c0_35 = arith.constant 0 : index
    %c0_36 = arith.constant 0 : index
    %147 = vector.load %arg5[%c0_34, %c0_35, %c0_36] : memref<1x8x5xf32, #tpu.memory_space<vmem>>, vector<1x8x5xf32>
    %148 = vector.shape_cast %147 : vector<1x8x5xf32> to vector<8x5xf32>
    %149 = vector.shape_cast %146 : vector<8x5xf32> to vector<1x8x5xf32>
    tpu.vector_store %arg5[%c0_34, %c0_35, %c0_36], %149 {strides = array<i32>} : memref<1x8x5xf32, #tpu.memory_space<vmem>>, vector<1x8x5xf32>,
    return
  }
  func.func @transform_0(%arg0: i32) -> (i32, i32, i32) {
    %c0_i32 = arith.constant 0 : i32
    %c0_i32_0 = arith.constant 0 : i32
    %c0_i32_1 = arith.constant 0 : i32
    return %arg0, %c0_i32, %c0_i32_0 : i32, i32, i32
  }
  func.func @transform_1(%arg0: i32) -> (i32, i32, i32) {
    %c0_i32 = arith.constant 0 : i32
    %c0_i32_0 = arith.constant 0 : i32
    %c0_i32_1 = arith.constant 0 : i32
    return %arg0, %c0_i32, %c0_i32_0 : i32, i32, i32
  }
  func.func @transform_2(%arg0: i32) -> (i32, i32, i32) {
    %c0_i32 = arith.constant 0 : i32
    %c0_i32_0 = arith.constant 0 : i32
    %c0_i32_1 = arith.constant 0 : i32
    return %arg0, %c0_i32, %c0_i32_0 : i32, i32, i32
  }
  func.func @transform_3(%arg0: i32) -> (i32, i32, i32) {
    %c0_i32 = arith.constant 0 : i32
    %c0_i32_0 = arith.constant 0 : i32
    %c0_i32_1 = arith.constant 0 : i32
    return %arg0, %c0_i32, %c0_i32_0 : i32, i32, i32
  }
  func.func @transform_4(%arg0: i32) -> (i32, i32, i32) {
    %c0_i32 = arith.constant 0 : i32
    %c0_i32_0 = arith.constant 0 : i32
    %c0_i32_1 = arith.constant 0 : i32
    return %arg0, %c0_i32, %c0_i32_0 : i32, i32, i32
  }
}

</mosaic_0001>

<bundles_post_ra>
// kernel: tpu_custom_call.1
= control target key start
LH: loop header
LB: loop body
LE: loop exit
PB: predicated region body
PF: predicated region fallthrough
CT: control target
= control target key end

     0   :  { %s584_s15 = smov 0   ;;  %s620_s0 = inlined_call_operand.vmem [shape: f32[6,8,1], index: 0, kind: input, shape index: {}]   ;;  %s621_s1 = inlined_call_operand.vmem [shape: f32[6,8,4], index: 1, kind: input, shape index: {}]   ;;  %s622_s2 = inlined_call_operand.vmem [shape: f32[6,1,5], index: 2, kind: input, shape index: {}]   ;;  %s623_s3 = inlined_call_operand.vmem [shape: f32[6,4,5], index: 3, kind: input, shape index: {}]   ;;  %s624_s4 = inlined_call_operand.vmem [shape: f32[6,8,5], index: 4, kind: output, shape index: {}]  }
   0x1 LB: > { %s501_s16 = sadd.s32 4294967295, %s551_s15   ;;  %p505_p0 = scmp.ge.s32.totalorder %s551_s15, 1  ;;  %s551_s15 = sphi %s584_s15, %s14_s15  }
   0x2   : > { %p187_p1 = scmp.lt.s32.totalorder %s551_s15, 7 }
   0x4   : > { %p188_p2 = pnand %p505_p0, %p187_p1 }
   0x5   : > { %p222_p3 = scmp.lt.s32.totalorder (!%p188_p2), %s501_s16, 5  ;;  %v553_v0 = vmov (!%p188_p2), 0   ;;  %v554_v1 = vmov (!%p188_p2), 1   ;;  %s555_s21 = smov (!%p188_p2), 126   ;;  %v557_v8 = vmov (!%p188_p2), 3   ;;  %v558_v27 = vmov (!%p188_p2), 2  }
   0x6   : > { %191 = sbr.rel (%p188_p2) target bundleno = 409 (0x199), region = 36  ;;  %527 = vset.pattern.permute.xlu1 (!%p188_p2), %v553_v0  ;;  %528 = vset.pattern.permute.xlu0 (!%p188_p2), %v554_v1  ;;  %s556_s22 = smov (!%p188_p2), 127   ;;  %v278_v32 = vlaneseq (!%p188_p2)  ;;  %vm413_vm0 = vcmask (!%p188_p2), 39936  }
   0x8   : > { %v279_v35 = vshrl.u32 (!%p188_p2), %v278_v32, 7 }
   0xa   : > { %v290_v38 = vsub.s32 (!%p188_p2), 1, %v279_v35  ;;  %v280_v39 = vsub.s32 (!%p188_p2), 0, %v279_v35 }
   0xd   : > { %s626_s16 = smov (!%p222_p3, %s501_s16), 5 }
   0xe   : > { %s595_s17 = sshll.u32 %s626_s16, 3  ;;  %s508_s26 = sshll.u32 %s626_s16, 2 }
   0xf   : > { %s229_s20 = scalar_lea.vmem %s621_s1, %s595_s17  ;;  %s225_s25 = scalar_lea.vmem %s620_s0, %s595_s17 }
  0x10   : > { %v242_v2 = vld [vmem:[%s229_s20] sm:$0xff]  ;;  %s236_s29 = scalar_lea.vmem %s623_s3, %s508_s26  ;;  %s232_s6 = scalar_lea.vmem %s622_s2, %s626_s16 }
  0x11   : > { %v317_v3 = vmul.f32 0.5, %v242_v2  ;;  %v241_v9 = vld [vmem:[%s225_s25] sm:$0xff]  ;;  %s240_s9 = scalar_lea.vmem %s624_s4, %s595_s17 }
  0x12   : > { %v247_v10 = vsub.f32 1.0, %v241_v9  ;;  %v255_v12 = vadd.f32 1e-08, %v241_v9  ;;  %v245_v17 = vmul.f32 %v241_v9, %v241_v9  ;;  %v244_v29 = vld [vmem:[%s236_s29] sm:$0xf] }
  0x13   : > { %319 = vrot.lane.b32.xlu0 %v317_v3, %s555_s21  ;;  %v324_v31 = vmul.f32 0.5, %v244_v29 }
  0x14   : > { %v248_v11 = vadd.f32 1e-08, %v247_v10  ;;  %v253_v19 = vmul.f32 %v247_v10, %v247_v10  ;;  %v246_v21 = vmul.f32 0.75, %v245_v17 }
  0x15   : > { %v326_v33 = vrot.slane %v324_v31, 2 }
  0x16   : > { %537 = vlog2.f32 %v248_v11  ;;  %v254_v23 = vmul.f32 0.25, %v253_v19  ;;  %v301_v11 = vsub.s32 2, %v279_v35 }
  0x17   : > { %539 = vlog2.f32 %v255_v12  ;;  %v329_v36 = vadd.f32 %v326_v33, %v244_v29  ;;  %v328_v37 = vsub.f32 %v244_v29, %v326_v33 }
  0x18   : > { %v302_v17 = vrot.slane %v244_v29, %v301_v11 }
  0x19   : > { %v379_v40 = vrot.slane %v328_v37, %v290_v38  ;;  %v336_v41 = vsub.f32 %v329_v36, %v328_v37  ;;  %v359_v43 = vrot.slane %v328_v37, %v280_v39  ;;  %v370_v44 = vrot.slane %v329_v36, %v290_v38 }
  0x1a   : > { %v349_v46 = vrot.slane %v329_v36, %v280_v39 }
  0x1b   : > { %v338_v48 = vrot.slane %v336_v41, 1 }
  0x1d   : > { %v340_v56 = vmul.f32 %v338_v48, %v336_v41 }
  0x1f   : > { %v392_v62 = vrot.slane %v340_v56, %v280_v39 }
  0x20   : > { %v538_v13 = vpop.eup %537 }
  0x21   : > { %v540_v14 = vpop.eup %539  ;;  %v250_v18 = vmul.f32 0.6931472, %v538_v13 }
  0x22   : > { %v257_v20 = vmul.f32 0.6931472, %v540_v14 }
  0x23   : > { %v251_v22 = vsub.f32 0.0, %v250_v18 }
  0x24   : > { %v258_v24 = vsub.f32 0.0, %v257_v20 }
  0x25   : > { %v252_v25 = vmul.f32 %v251_v22, %v246_v21 }
  0x26   : > { %v259_v26 = vmul.f32 %v258_v24, %v254_v23 }
  0x28   : > { %v260_v28 = vsub.f32 %v259_v26, %v252_v25 }
  0x85   : > { %v320_v4 = vpop.permute.xlu0 %319 }
  0x86   : > { %v322_v5 = vsub.f32 %v242_v2, %v320_v4  ;;  %v323_v6 = vadd.f32 %v320_v4, %v242_v2 }
  0x88   : > { %343 = vperm.xlu1 %527, %v323_v6   ;;  %v330_v7 = vsub.f32 %v323_v6, %v322_v5 }
  0x8a   : > { %332 = vrot.lane.b32.xlu0 %v330_v7, %s556_s22 }
  0x8c   : > { %353 = vperm.xlu1 %527, %v322_v5  }
  0x8e   : > { %364 = vperm.xlu0 %528, %v323_v6  }
  0x90   : > { %529 = vset.pattern.permute.xlu1 %v554_v1 }
  0x91   : > { %373 = vperm.xlu1 %529, %v322_v5  }
  0x92   : > { %531 = vset.pattern.permute.xlu0 %v553_v0 }
  0x93   : > { %275 = vperm.xlu0 %531, %v242_v2  }
  0x95   : > { %530 = vset.pattern.permute.xlu1 %v553_v0 }
  0x97   : > { %534 = vset.pattern.permute.xlu0 %v557_v8  ;;  %v312_v8 = vsub.s32 3, %v279_v35 }
  0x98   : > { %307 = vperm.xlu0 %534, %v242_v2  }
  0x9c   : > { %536 = vset.pattern.permute.xlu0 %v553_v0 }
  0xfc   : > { %v333_v15 = vpop.permute.xlu0 %332 }
  0xfd   : > { %v335_v16 = vmul.f32 %v333_v15, %v330_v7  ;;  %v291_v7 = vrot.slane %v244_v29, %v290_v38  ;;  %v313_v15 = vrot.slane %v244_v29, %v312_v8 }
  0xff   : > { %386 = vperm.xlu1 %530, %v335_v16  }
 0x103   : > { %532 = vset.pattern.permute.xlu1 %v554_v1  ;;  %v281_v1 = vrot.slane %v244_v29, %v280_v39 }
 0x104   : > { %285 = vperm.xlu1 %532, %v242_v2  }
 0x107   : > { %v344_v30 = vpop.permute.xlu1 %343 }
 0x108   : > { %533 = vset.pattern.permute.xlu1 %v558_v27  ;;  %v350_v54 = vmin.f32 %v344_v30, %v349_v46  ;;  %v398_v57 = vmax.f32 %v344_v30, %v349_v46 }
 0x109   : > { %296 = vperm.xlu1 %533, %v242_v2  }
 0x10b   : > { %v354_v34 = vpop.permute.xlu1 %353 }
 0x10c   : > { %v360_v50 = vmax.f32 %v354_v34, %v359_v43  ;;  %v399_v52 = vmin.f32 %v354_v34, %v359_v43 }
 0x10d   : > { %535 = vset.pattern.permute.xlu1 %v553_v0  ;;  %v365_v45 = vpop.permute.xlu0 %364 }
 0x10e   : > { %263 = vperm.xlu1 %535, %v260_v28   ;;  %v371_v51 = vmin.f32 %v365_v45, %v370_v44  ;;  %v401_v53 = vmax.f32 %v365_v45, %v370_v44  ;;  %v361_v59 = vsub.f32 %v350_v54, %v360_v50  ;;  %v400_v60 = vsub.f32 %v398_v57, %v399_v52  ;;  %v510_v28 = vld [vmem:[%s232_s6] ss:$0 sm:$0xff] }
 0x110   : > { %v374_v42 = vpop.permute.xlu1 %373  ;;  %v362_v0 = vmax.f32 %v361_v59, 0.0 }
 0x111   : > { %v380_v47 = vmax.f32 %v374_v42, %v379_v40  ;;  %v402_v49 = vmin.f32 %v374_v42, %v379_v40 }
 0x112   : > { %v276_v3 = vpop.permute.xlu0 %275 }
 0x113   : > { %v381_v55 = vsub.f32 %v371_v51, %v380_v47  ;;  %v403_v58 = vsub.f32 %v401_v53, %v402_v49  ;;  %v282_v10 = vsub.f32 %v276_v3, %v281_v1 }
 0x115   : > { %v382_v61 = vmax.f32 %v381_v55, 0.0  ;;  %v404_v63 = vmul.f32 %v403_v58, %v400_v60  ;;  %v283_v16 = vand.u32 2147483647, %v282_v10 }
 0x117   : > { %v383_v4 = vmul.f32 %v382_v61, %v362_v0  ;;  %v405_v6 = vmax.f32 %v404_v63, 1e-12  ;;  %v308_v18 = vpop.permute.xlu0 %307 }
 0x118   : > { %v314_v21 = vsub.f32 %v308_v18, %v313_v15 }
 0x119   : > { %541 = vrcp.f32 %v405_v6 }
 0x11a   : > { %v315_v26 = vand.u32 2147483647, %v314_v21 }
 0x123   : > { %v542_v31 = vpop.eup %541 }
 0x17e   : > { %v387_v2 = vpop.permute.xlu1 %386 }
 0x17f   : > { %v393_v5 = vadd.f32 %v392_v62, %v387_v2 }
 0x181   : > { %v394_v9 = vsub.f32 %v393_v5, %v383_v4 }
 0x183   : > { %v395_v12 = vmax.f32 %v394_v9, 1e-12  ;;  %v286_v13 = vpop.permute.xlu1 %285  ;;  %v406_v25 = vsub.f32 %v405_v6, %v394_v9 }
 0x184   : > { %v292_v14 = vsub.f32 %v286_v13, %v291_v7 }
 0x185   : > { %543 = vrcp.f32 %v395_v12  ;;  %v408_v33 = vmul.f32 %v542_v31, %v406_v25 }
 0x186   : > { %v293_v19 = vand.u32 2147483647, %v292_v14 }
 0x188   : > { %v297_v20 = vpop.permute.xlu1 %296  ;;  %v294_v22 = vadd.f32 %v293_v19, %v283_v16 }
 0x189   : > { %v303_v23 = vsub.f32 %v297_v20, %v302_v17 }
 0x18b   : > { %v304_v24 = vand.u32 2147483647, %v303_v23 }
 0x18d   : > { %v305_v27 = vadd.f32 %v304_v24, %v294_v22  ;;  %v264_v30 = vpop.permute.xlu1 %263 }
 0x18e   : > { %v272_v35 = vmul.f32 %v510_v28, %v264_v30 }
 0x18f   : > { %v544_v32 = vpop.eup %543  ;;  %v316_v34 = vadd.f32 %v315_v26, %v305_v27 }
 0x190   : > { %v397_v29 = vmul.f32 %v544_v32, %v383_v4 }
 0x191   : > { %v411_v38 = vadd.f32 %v316_v34, %v272_v35 }
 0x192   : > { %v409_v36 = vsub.f32 %v397_v29, %v408_v33 }
 0x194   : > { %v410_v37 = vsub.f32 0.0, %v409_v36 }
 0x196   : > { %v412_v39 = vadd.f32 %v411_v38, %v410_v37 }
 0x198   : > { %414 = vst.msk [vmem:[%s240_s9] sm:$0xff] %vm413_vm0, %v412_v39 }
 0x199 PF: > { %s14_s15 = sadd.s32 1, %s551_s15  }
 0x19a   : > { %p11_p4 = scmp.ge.s32.totalorder %s14_s15, 8  }
 0x19c   :  { %13 = sbr.rel (!%p11_p4) target bundleno = 1 (0x1), region = 75 }

</bundles_post_ra>
